<compile_context>
chip_gen: v5e
topology: v5e:2x2
jax: 0.10.0
libtpu: 0.0.40
codegen_flags: <defaults>
</compile_context>

<pallas_src>
import functools

import jax
import jax.numpy as jnp
from jax.experimental import pallas as pl
from jax.experimental.pallas import tpu as pltpu


def _round_up(x, m):
    return (x + m - 1) // m * m


def _masked_log_softmax(z, n_valid_cols):
    """log_softmax over the first n_valid_cols lanes; padded lanes masked."""
    col = jax.lax.broadcasted_iota(jnp.int32, z.shape, 1)
    z = jnp.where(col < n_valid_cols, z, jnp.float32(-1e30))
    m = jnp.max(z, axis=-1, keepdims=True)
    lse = jnp.log(jnp.sum(jnp.exp(z - m), axis=-1, keepdims=True)) + m
    return z - lse


# ----------------------------------------------------------------------------
# Fully fused single-call kernel (small graphs: everything VMEM-resident,
# A_hat read from HBM exactly once).
# ----------------------------------------------------------------------------
def _fused_kernel(a_ref, xw1_ref, b1_ref, w2_ref, b2_ref, o_ref, *, n_valid_cols):
    a = a_ref[...]                                                  # (Np, Np) bf16
    h = jnp.maximum(
        jnp.dot(a, xw1_ref[...], preferred_element_type=jnp.float32) + b1_ref[...],
        0.0)                                                        # (Np, Hp) f32
    hw2 = jnp.dot(h.astype(jnp.bfloat16), w2_ref[...],
                  preferred_element_type=jnp.float32)               # (Np, Cp) f32
    z = jnp.dot(a, hw2.astype(jnp.bfloat16),
                preferred_element_type=jnp.float32) + b2_ref[...]   # (Np, Cp) f32
    o_ref[...] = _masked_log_softmax(z, n_valid_cols)


def _gcn_fused(a_p, xw1_p, b1_p, w2_p, b2_p, n_valid_cols):
    n_pad = a_p.shape[0]
    c_pad = w2_p.shape[1]
    return pl.pallas_call(
        functools.partial(_fused_kernel, n_valid_cols=n_valid_cols),
        out_shape=jax.ShapeDtypeStruct((n_pad, c_pad), jnp.float32),
        compiler_params=pltpu.CompilerParams(vmem_limit_bytes=48 << 20),
    )(a_p, xw1_p, b1_p, w2_p, b2_p)


# ----------------------------------------------------------------------------
# Streamed / tiled path (large graphs).
# ----------------------------------------------------------------------------
def _layer1_kernel(a_ref, f_ref, b1_ref, w2_ref, o_ref, acc_ref, *, tk):
    """Row block of  hw2 = relu(A_hat @ xw1 + b1) @ W2   (output in bf16).

    a_ref : (TM, TK)      bf16 A_hat tile
    f_ref : (Np, Hp)      bf16 resident xw1 (sliced with pl.ds per K step)
    b1_ref: (1, Hp)       f32 bias
    w2_ref: (Hp, Cp)      bf16 resident W2
    o_ref : (TM, Cp)      bf16 output block (resident across K)
    acc   : (TM, Hp)      f32 accumulator scratch
    """
    k = pl.program_id(1)

    @pl.when(k == 0)
    def _():
        acc_ref[...] = jnp.zeros_like(acc_ref)

    ks = pl.multiple_of(k * tk, tk)
    acc_ref[...] += jnp.dot(a_ref[...], f_ref[pl.ds(ks, tk), :],
                            preferred_element_type=jnp.float32)

    @pl.when(k == pl.num_programs(1) - 1)
    def _():
        h = jnp.maximum(acc_ref[...] + b1_ref[...], 0.0)
        o_ref[...] = jnp.dot(h.astype(jnp.bfloat16), w2_ref[...],
                             preferred_element_type=jnp.float32
                             ).astype(o_ref.dtype)


def _layer2_kernel(a_ref, g_ref, b2_ref, o_ref, *, tk, n_valid_cols):
    """Row block of  log_softmax(A_hat @ hw2 + b2); accumulates into o_ref.

    a_ref : (TM, TK)  bf16 A_hat tile
    g_ref : (Np, Cp)  bf16 resident hw2
    b2_ref: (1, Cp)   f32 bias
    o_ref : (TM, Cp)  f32 output block, doubles as accumulator (resident)
    """
    k = pl.program_id(1)

    @pl.when(k == 0)
    def _():
        o_ref[...] = jnp.zeros_like(o_ref)

    ks = pl.multiple_of(k * tk, tk)
    o_ref[...] += jnp.dot(a_ref[...], g_ref[pl.ds(ks, tk), :],
                          preferred_element_type=jnp.float32)

    @pl.when(k == pl.num_programs(1) - 1)
    def _():
        o_ref[...] = _masked_log_softmax(o_ref[...] + b2_ref[...], n_valid_cols)


def _gcn_streamed(a_p, xw1_p, b1_p, w2_p, b2_p, n_valid_cols, *, tm, tk):
    n_pad = a_p.shape[0]
    h_pad = xw1_p.shape[1]
    c_pad = w2_p.shape[1]
    grid = (n_pad // tm, n_pad // tk)
    cparams = pltpu.CompilerParams(
        dimension_semantics=("parallel", "arbitrary"),
        vmem_limit_bytes=48 << 20,   # safe on v5e/v6e (128 MiB) and v7x (64 MiB)
    )

    # Layer 1: hw2 = relu(A_hat @ xw1 + b1) @ W2, written directly as bf16.
    hw2_p = pl.pallas_call(
        functools.partial(_layer1_kernel, tk=tk),
        out_shape=jax.ShapeDtypeStruct((n_pad, c_pad), jnp.bfloat16),
        grid=grid,
        in_specs=[
            pl.BlockSpec((tm, tk), lambda i, k: (i, k)),        # A_hat tile
            pl.BlockSpec((n_pad, h_pad), lambda i, k: (0, 0)),  # resident xw1
            pl.BlockSpec((1, h_pad), lambda i, k: (0, 0)),      # b1
            pl.BlockSpec((h_pad, c_pad), lambda i, k: (0, 0)),  # resident W2
        ],
        out_specs=pl.BlockSpec((tm, c_pad), lambda i, k: (i, 0)),
        scratch_shapes=[pltpu.VMEM((tm, h_pad), jnp.float32)],
        compiler_params=cparams,
    )(a_p, xw1_p, b1_p, w2_p)

    # Layer 2: log_softmax(A_hat @ hw2 + b2); acc lives in the f32 output block.
    out_p = pl.pallas_call(
        functools.partial(_layer2_kernel, tk=tk, n_valid_cols=n_valid_cols),
        out_shape=jax.ShapeDtypeStruct((n_pad, c_pad), jnp.float32),
        grid=grid,
        in_specs=[
            pl.BlockSpec((tm, tk), lambda i, k: (i, k)),        # A_hat tile
            pl.BlockSpec((n_pad, c_pad), lambda i, k: (0, 0)),  # resident hw2
            pl.BlockSpec((1, c_pad), lambda i, k: (0, 0)),      # b2
        ],
        out_specs=pl.BlockSpec((tm, c_pad), lambda i, k: (i, 0)),
        compiler_params=cparams,
    )(a_p, hw2_p, b2_p)
    return out_p


# ----------------------------------------------------------------------------
# Forward pass.
# ----------------------------------------------------------------------------
def gcn_forward(x, edge_index, params, *, fused_threshold=2048):
    """x: (N, F_in) f32, edge_index: (2, E) int32, params = (W1, b1, W2, b2)."""
    w1, b1, w2, b2 = params
    n, dim_in = x.shape
    dim_hidden = w1.shape[1]
    dim_out = w2.shape[1]

    fused = n <= fused_threshold
    if fused:
        n_pad = _round_up(n, 128)
    else:
        n_pad = _round_up(n, 512)
        tm = tk = 512          # n_pad/tm >= 2 on this path -> both v7x TCs busy

    h_pad = _round_up(dim_hidden, 128)
    c_pad = _round_up(dim_out, 128)

    # --- Glue (plain JAX): dense normalized adjacency built directly padded ---
    # TODO(synk): for genuinely sparse graphs switch to a scalar-prefetch CSR
    # gather kernel instead of densifying to (N, N).
    src, dst = edge_index[0], edge_index[1]
    a_p = jnp.zeros((n_pad, n_pad), jnp.float32)
    a_p = a_p.at[dst, src].add(1.0)                      # src -> dst messages
    diag = jnp.arange(n)
    a_p = a_p.at[diag, diag].add(1.0)                    # self loops
    deg = jnp.sum(a_p, axis=1)                           # padded rows -> deg 0
    dinv = jnp.where(deg > 0, jax.lax.rsqrt(deg), 0.0)
    a_p = (dinv[:, None] * a_p * dinv[None, :]).astype(jnp.bfloat16)

    # --- Tiny feature transform x @ W1 (K = F_in) hoisted to XLA, padded ---
    x_p = jnp.zeros((n_pad, dim_in), jnp.float32).at[:n].set(x)
    w1_p = jnp.zeros((dim_in, h_pad), jnp.float32).at[:, :dim_hidden].set(w1)
    xw1_p = (x_p @ w1_p).astype(jnp.bfloat16)
    b1_p = jnp.zeros((1, h_pad), jnp.float32).at[0, :dim_hidden].set(b1)
    w2_p = (jnp.zeros((h_pad, c_pad), jnp.float32)
            .at[:dim_hidden, :dim_out].set(w2)).astype(jnp.bfloat16)
    b2_p = jnp.zeros((1, c_pad), jnp.float32).at[0, :dim_out].set(b2)

    if fused:
        out_p = _gcn_fused(a_p, xw1_p, b1_p, w2_p, b2_p, dim_out)
    else:
        out_p = _gcn_streamed(a_p, xw1_p, b1_p, w2_p, b2_p, dim_out, tm=tm, tk=tk)

    return out_p[:n, :dim_out]


def _reference(x, edge_index, params):
    """Pure-JAX f32 reference for sanity checking."""
    w1, b1, w2, b2 = params
    n = x.shape[0]
    src, dst = edge_index[0], edge_index[1]
    a = jnp.zeros((n, n), jnp.float32).at[dst, src].add(1.0)
    a = a + jnp.eye(n, dtype=jnp.float32)
    deg = jnp.sum(a, axis=1)
    dinv = jnp.where(deg > 0, 1.0 / jnp.sqrt(deg), 0.0)
    a_hat = dinv[:, None] * a * dinv[None, :]
    h = jnp.maximum(a_hat @ (x @ w1) + b1, 0.0)
    z = a_hat @ (h @ w2) + b2
    return jax.nn.log_softmax(z, axis=-1)


if __name__ == "__main__":
    key = jax.random.PRNGKey(0)
    dim_in, dim_hidden, dim_out = 8, 128, 4   # module default dim_hidden=128

    # Deterministic glorot-uniform weights, zero biases (GCNConv default init).
    def glorot(k, shape):
        limit = (6.0 / (shape[0] + shape[1])) ** 0.5
        return jax.random.uniform(k, shape, jnp.float32, -limit, limit)

    k_w, k_g1, k_g2 = jax.random.split(key, 3)
    kw1, kw2 = jax.random.split(k_w)
    w1 = glorot(kw1, (dim_in, dim_hidden))
    b1 = jnp.zeros((dim_hidden,), jnp.float32)
    w2 = glorot(kw2, (dim_hidden, dim_out))
    b2 = jnp.zeros((dim_out,), jnp.float32)
    params = (w1, b1, w2, b2)

    def make_graph(k, n, e):
        kx, ks, kd = jax.random.split(k, 3)
        xg = jax.random.normal(kx, (n, dim_in), jnp.float32)
        sg = jax.random.randint(ks, (e,), 0, n, dtype=jnp.int32)
        dg = jax.random.randint(kd, (e,), 0, n, dtype=jnp.int32)
        return xg, jnp.stack([sg, dg])

    # Small graph -> fully fused single-call path (A_hat read once, on-chip h).
    x1, ei1 = make_graph(k_g1, 16, 40)
    out1 = gcn_forward(x1, ei1, params)
    jax.block_until_ready(out1)
    assert out1.shape == (16, dim_out)
    ref1 = _reference(x1, ei1, params)
    assert jnp.max(jnp.abs(out1 - ref1)) < 1e-1   # bf16 MXU inputs -> loose tol

    # Larger graph forced through the tiled / streamed path (grid (2, 2)),
    # exercising resident-F slicing, pl.when init/finalize and the fused h@W2.
    x2, ei2 = make_graph(k_g2, 600, 2400)
    out2 = gcn_forward(x2, ei2, params, fused_threshold=0)
    jax.block_until_ready(out2)
    assert out2.shape == (600, dim_out)
    ref2 = _reference(x2, ei2, params)
    assert jnp.max(jnp.abs(out2 - ref2)) < 1e-1

    print("KERNEL_OK")
</pallas_src>

<mosaic_0001>
module attributes {stable_mosaic.version = 11 : i64} {
  func.func @_fused_kernel(%arg0: memref<128x128xbf16, #tpu.memory_space<vmem>>, %arg1: memref<128x128xbf16, #tpu.memory_space<vmem>>, %arg2: memref<1x128xf32, #tpu.memory_space<vmem>>, %arg3: memref<128x128xbf16, #tpu.memory_space<vmem>>, %arg4: memref<1x128xf32, #tpu.memory_space<vmem>>, %arg5: memref<128x128xf32, #tpu.memory_space<vmem>>) attributes {dimension_semantics = [], scalar_prefetch = 0 : i64, scratch_operands = 0 : i64, tpu.core_type = #tpu.core_type<tc>} {
    %c0 = arith.constant 0 : index
    %c0_0 = arith.constant 0 : index
    %0 = vector.load %arg0[%c0, %c0_0] : memref<128x128xbf16, #tpu.memory_space<vmem>>, vector<128x128xbf16>
    %c0_1 = arith.constant 0 : index
    %c0_2 = arith.constant 0 : index
    %1 = vector.load %arg1[%c0_1, %c0_2] : memref<128x128xbf16, #tpu.memory_space<vmem>>, vector<128x128xbf16>
    %cst = arith.constant dense<0.000000e+00> : vector<128x128xf32>
    %2 = tpu.matmul %0, %1, %cst {dimension_numbers = #tpu.dot_dimension_numbers<[1], [0], [0], [1], [0, 0, 1, 1], [], []>} : vector<128x128xbf16>, vector<128x128xbf16>, vector<128x128xf32> -> vector<128x128xf32>
    %c0_3 = arith.constant 0 : index
    %c0_4 = arith.constant 0 : index
    %3 = vector.load %arg2[%c0_3, %c0_4] : memref<1x128xf32, #tpu.memory_space<vmem>>, vector<1x128xf32>
    %4 = vector.broadcast %3 : vector<1x128xf32> to vector<128x128xf32>
    %5 = arith.addf %2, %4 : vector<128x128xf32>
    %cst_5 = arith.constant 0.000000e+00 : f32
    %6 = vector.broadcast %cst_5 : f32 to vector<128x128xf32>
    %7 = arith.maximumf %5, %6 : vector<128x128xf32>
    %8 = arith.truncf %7 : vector<128x128xf32> to vector<128x128xbf16>
    %c0_6 = arith.constant 0 : index
    %c0_7 = arith.constant 0 : index
    %9 = vector.load %arg3[%c0_6, %c0_7] : memref<128x128xbf16, #tpu.memory_space<vmem>>, vector<128x128xbf16>
    %cst_8 = arith.constant dense<0.000000e+00> : vector<128x128xf32>
    %10 = tpu.matmul %8, %9, %cst_8 {dimension_numbers = #tpu.dot_dimension_numbers<[1], [0], [0], [1], [0, 0, 1, 1], [], []>} : vector<128x128xbf16>, vector<128x128xbf16>, vector<128x128xf32> -> vector<128x128xf32>
    %11 = arith.truncf %10 : vector<128x128xf32> to vector<128x128xbf16>
    %cst_9 = arith.constant dense<0.000000e+00> : vector<128x128xf32>
    %12 = tpu.matmul %0, %11, %cst_9 {dimension_numbers = #tpu.dot_dimension_numbers<[1], [0], [0], [1], [0, 0, 1, 1], [], []>} : vector<128x128xbf16>, vector<128x128xbf16>, vector<128x128xf32> -> vector<128x128xf32>
    %c0_10 = arith.constant 0 : index
    %c0_11 = arith.constant 0 : index
    %13 = vector.load %arg4[%c0_10, %c0_11] : memref<1x128xf32, #tpu.memory_space<vmem>>, vector<1x128xf32>
    %14 = vector.broadcast %13 : vector<1x128xf32> to vector<128x128xf32>
    %15 = arith.addf %12, %14 : vector<128x128xf32>
    %16 = tpu.iota {dimensions = array<i32: 1>} : vector<128x128xi32>
    %c4_i32 = arith.constant 4 : i32
    %17 = vector.broadcast %c4_i32 : i32 to vector<128x128xi32>
    %18 = arith.cmpi slt, %16, %17 : vector<128x128xi32>
    %cst_12 = arith.constant -1.000000e+30 : f32
    %19 = vector.broadcast %cst_12 : f32 to vector<128x128xf32>
    %20 = arith.select %18, %15, %19 : vector<128x128xi1>, vector<128x128xf32>
    %cst_13 = arith.constant dense<0xFF800000> : vector<128xf32>
    %21 = vector.multi_reduction <maximumf>, %20, %cst_13 [1] : vector<128x128xf32> to vector<128xf32>
    %22 = vector.shape_cast %21 : vector<128xf32> to vector<128x1xf32>
    %23 = vector.broadcast %22 : vector<128x1xf32> to vector<128x128xf32>
    %24 = arith.subf %20, %23 : vector<128x128xf32>
    %25 = math.exp %24 : vector<128x128xf32>
    %cst_14 = arith.constant dense<0.000000e+00> : vector<128xf32>
    %26 = vector.multi_reduction <add>, %25, %cst_14 [1] : vector<128x128xf32> to vector<128xf32>
    %27 = vector.shape_cast %26 : vector<128xf32> to vector<128x1xf32>
    %28 = math.log %27 : vector<128x1xf32>
    %29 = arith.addf %28, %22 : vector<128x1xf32>
    %30 = vector.broadcast %29 : vector<128x1xf32> to vector<128x128xf32>
    %31 = arith.subf %20, %30 : vector<128x128xf32>
    %c0_15 = arith.constant 0 : index
    %c0_16 = arith.constant 0 : index
    %32 = vector.load %arg5[%c0_15, %c0_16] : memref<128x128xf32, #tpu.memory_space<vmem>>, vector<128x128xf32>
    tpu.vector_store %arg5[%c0_15, %c0_16], %31 {strides = array<i32>} : memref<128x128xf32, #tpu.memory_space<vmem>>, vector<128x128xf32>,
    return
  }
}

</mosaic_0001>

<bundles_post_ra>
// kernel: tpu_custom_call.1
= control target key start
LH: loop header
LB: loop body
LE: loop exit
PB: predicated region body
PF: predicated region fallthrough
CT: control target
= control target key end

     0   :  { %10 = vsyncpa [#allocation3], 0  ;;  %s1283_s0 = inlined_call_operand.hbm [shape: bf16[128,128], index: 0, kind: input, shape index: {}]   ;;  %s1284_s1 = inlined_call_operand.hbm [shape: bf16[128,128], index: 1, kind: input, shape index: {}]   ;;  %s1285_s2 = inlined_call_operand.vmem [shape: f32[1,128], index: 2, kind: input, shape index: {}]   ;;  %s1286_s3 = inlined_call_operand.hbm [shape: bf16[128,128], index: 3, kind: input, shape index: {}]   ;;  %s1287_s4 = inlined_call_operand.vmem [shape: f32[1,128], index: 4, kind: input, shape index: {}]   ;;  %s1288_s5 = inlined_call_operand.hbm [shape: f32[128,128], index: 5, kind: output, shape index: {}]  }
   0x1   :  { %11 = vsyncpa [#allocation6], 0 }
   0x2   :  { %12 = vsyncpa [#allocation4], 0  ;;  %s30_s20 = sshll.u32 %s1284_s1, 4  ;;  %s998_s21 = smov [#allocation5]   ;;  %s31_s20 = int_to_ptr.hbm [resolvable:$true] %s30_s20 }
   0x3   :  { %s32_s22 = sshll.u32 %s998_s21, 4  ;;  %s17_s25 = sshll.u32 %s1283_s0, 4  ;;  %s33_s22 = int_to_ptr.vmem [resolvable:$true] %s32_s22  ;;  %s18_s25 = int_to_ptr.hbm [resolvable:$true] %s17_s25 }
   0x4   :  { %s999_s26 = smov 64   ;;  %s1000_s27 = smov 4  }
   0x5   :  { %38 = dma.hbm_to_vmem [thread:$0]  %s31_s20, 1024, %s33_s22, [#allocation6], %s999_s26, %s999_s26, %s1000_s27  }
   0x6   :  { %s1001_s28 = smov [#allocation2]   ;;  %s45_s7 = sshll.u32 %s1286_s3, 4  ;;  %s46_s7 = int_to_ptr.hbm [resolvable:$true] %s45_s7 }
   0x7   :  { %s19_s29 = sshll.u32 %s1001_s28, 4  ;;  %s1002_s1 = smov [#allocation7]   ;;  %s20_s29 = int_to_ptr.vmem [resolvable:$true] %s19_s29 }
   0x8   :  { %25 = dma.hbm_to_vmem [thread:$0]  %s18_s25, 1024, %s20_s29, [#allocation3], %s999_s26, %s999_s26, %s1000_s27  }
   0x9   :  { %s47_s8 = sshll.u32 %s1002_s1, 4  ;;  %s48_s8 = int_to_ptr.vmem [resolvable:$true] %s47_s8 }
   0xa   :  { %53 = dma.hbm_to_vmem [thread:$0]  %s46_s7, 1024, %s48_s8, [#allocation6], %s999_s26, %s999_s26, %s1000_s27  }
   0xb   :  { %992 = dma.done.wait [#allocation3], 1024  }
   0xc   :  { %993 = vsyncadd [#allocation3], 4294966272 }
   0xd   :  { %994 = dma.done.wait [#allocation6], 2048  }
   0xe   :  { %995 = vsyncadd [#allocation6], 4294965248  ;;  %v789_v0 = vld [vmem:[#allocation5 + $0x38] sm:$0xff]  ;;  %v788_v1 = vld [vmem:[#allocation5 + $0x30] sm:$0xff]  ;;  %s664_s13 = sshll.u32 %s1288_s5, 4  ;;  %s1004_s14 = smov 128   ;;  %s665_s13 = int_to_ptr.hbm [resolvable:$true] %s664_s13 }
   0xf   :  { %200 = vmatpush.bf16.msra.mxu0 %v789_v0  ;;  %798 = vmatpush.bf16.msra.mxu3 %v789_v0  ;;  %v787_v2 = vld [vmem:[#allocation5 + $0x28] sm:$0xff]  ;;  %v786_v3 = vld [vmem:[#allocation5 + $0x20] sm:$0xff]  ;;  %v785_v4 = vld [vmem:[#allocation5 + $0x18] sm:$0xff]  ;;  %s1005_s15 = smov 8  }
  0x10   :  { %v784_v5 = vld [vmem:[#allocation5 + $0x10] sm:$0xff]  ;;  %v783_v6 = vld [vmem:[#allocation5 + $0x8] sm:$0xff]  ;;  %v782_v7 = vld [vmem:[#allocation5] sm:$0xff] }
  0x11   :  { %v1045_v8 = vld [vmem:[#allocation2] sm:$0xff]  ;;  %v1047_v9 = vld [vmem:[#allocation2 + $0x30] sm:$0xff]  ;;  %v1051_v10 = vld [vmem:[#allocation2 + $0x8] sm:$0xff] }
  0x12   :  { %v1053_v11 = vld [vmem:[#allocation2 + $0x38] sm:$0xff]  ;;  %v1057_v12 = vld [vmem:[#allocation2 + $0x10] sm:$0xff]  ;;  %v795_v16 = vld [vmem:[#allocation7 + $0x28] sm:$0xff] }
  0x13   :  { %201 = vmatpush.bf16.msra.mxu0 %v788_v1  ;;  %799 = vmatpush.bf16.msra.mxu3 %v788_v1  ;;  %v1060_v13 = vld [vmem:[#allocation2 + $0x18] sm:$0xff]  ;;  %v796_v15 = vld [vmem:[#allocation7 + $0x30] sm:$0xff]  ;;  %v794_v17 = vld [vmem:[#allocation7 + $0x20] sm:$0xff] }
  0x14   :  { %v797_v14 = vld [vmem:[#allocation7 + $0x38] sm:$0xff]  ;;  %v1063_v18 = vld [vmem:[#allocation2 + $0x20] sm:$0xff]  ;;  %v1066_v19 = vld [vmem:[#allocation2 + $0x28] sm:$0xff] }
  0x15   :  { %337 = vmatpush.bf16.msra.mxu1 %v797_v14  ;;  %v793_v20 = vld [vmem:[#allocation7 + $0x18] sm:$0xff]  ;;  %v792_v21 = vld [vmem:[#allocation7 + $0x10] sm:$0xff]  ;;  %v791_v22 = vld [vmem:[#allocation7 + $0x8] sm:$0xff] }
  0x16   :  { %v790_v23 = vld [vmem:[#allocation7] sm:$0xff] }
  0x17   :  { %202 = vmatpush.bf16.msra.mxu0 %v787_v2  ;;  %800 = vmatpush.bf16.msra.mxu3 %v787_v2  ;;  %v830_v25 = vld [vmem:[%s1285_s2] ss:$0 sm:$0xff] }
  0x19   :  { %338 = vmatpush.bf16.msra.mxu1 %v796_v15 }
  0x1b   :  { %203 = vmatpush.bf16.msra.mxu0 %v786_v3  ;;  %801 = vmatpush.bf16.msra.mxu3 %v786_v3 }
  0x1d   :  { %339 = vmatpush.bf16.msra.mxu1 %v795_v16 }
  0x1f   :  { %204 = vmatpush.bf16.msra.mxu0 %v785_v4  ;;  %802 = vmatpush.bf16.msra.mxu3 %v785_v4 }
  0x21   :  { %340 = vmatpush.bf16.msra.mxu1 %v794_v17 }
  0x23   :  { %205 = vmatpush.bf16.msra.mxu0 %v784_v5  ;;  %803 = vmatpush.bf16.msra.mxu3 %v784_v5 }
  0x25   :  { %341 = vmatpush.bf16.msra.mxu1 %v793_v20 }
  0x27   :  { %206 = vmatpush.bf16.msra.mxu0 %v783_v6  ;;  %804 = vmatpush.bf16.msra.mxu3 %v783_v6 }
  0x29   :  { %342 = vmatpush.bf16.msra.mxu1 %v792_v21 }
  0x2b   :  { %207 = vmatpush.bf16.msra.mxu0 %v782_v7  ;;  %805 = vmatpush.bf16.msra.mxu3 %v782_v7 }
  0x2d   :  { %343 = vmatpush.bf16.msra.mxu1 %v791_v22 }
  0x2e   :  { %208 = vmatmul.bf16.vlgmr.msra.gmra.mxu0 %v1045_v8  ;;  %238 = vmatmul.bf16.vlgmr.msra.gmra.mxu3 %v1047_v9 }
  0x2f   :  { %806 = vmatpush.bf16.msrb.mxu3 %v797_v14 }
  0x31   :  { %344 = vmatpush.bf16.msra.mxu1 %v790_v23 }
  0x33   :  { %807 = vmatpush.bf16.msrb.mxu3 %v796_v15 }
  0x37   :  { %808 = vmatpush.bf16.msrb.mxu3 %v795_v16 }
  0x3b   :  { %809 = vmatpush.bf16.msrb.mxu3 %v794_v17 }
  0x3e   :  { %213 = vmatmul.bf16.gmra.mxu0 %v1051_v10  ;;  %243 = vmatmul.bf16.gmra.mxu3 %v1053_v11 }
  0x3f   :  { %810 = vmatpush.bf16.msrb.mxu3 %v793_v20 }
  0x43   :  { %811 = vmatpush.bf16.msrb.mxu3 %v792_v21 }
  0x47   :  { %812 = vmatpush.bf16.msrb.mxu3 %v791_v22 }
  0x4b   :  { %813 = vmatpush.bf16.msrb.mxu3 %v790_v23 }
  0x4e   :  { %218 = vmatmul.bf16.gmra.mxu0 %v1057_v12 }
  0x5e   :  { %223 = vmatmul.bf16.gmra.mxu0 %v1060_v13 }
  0x6e   :  { %228 = vmatmul.bf16.gmra.mxu0 %v1063_v18 }
  0x7e   :  { %233 = vmatmul.bf16.gmra.mxu0 %v1066_v19 }
  0xab   :  { %v209_v24 = vpop.f32.mrf.mxu0 }
  0xac   :  { %v210_v27 = vadd.f32 %v830_v25, %v209_v24 }
  0xae   :  { %v249_v30 = vmax.f32 %v210_v27, 0.0 }
  0xb1   :  { %v239_v26 = vpop.f32.mrf.mxu3 }
  0xb2   :  { %v240_v32 = vadd.f32 %v830_v25, %v239_v26 }
  0xb3   :  { %v211_v28 = vpop.f32.mrf.mxu0 }
  0xb4   :  { %v212_v29 = vadd.f32 %v830_v25, %v211_v28  ;;  %v261_v35 = vmax.f32 %v240_v32, 0.0 }
  0xb6   :  { %v250_v31 = vmax.f32 %v212_v29, 0.0 }
  0xb8   :  { %v265_v33 = vpack.c.bf16 %v250_v31, %v249_v30 }
  0xb9   :  { %v241_v34 = vpop.f32.mrf.mxu3 }
  0xba   :  { %345 = vmatmul.bf16.vlgmr.msra.gmra.mxu1 %v265_v33  ;;  %v242_v36 = vadd.f32 %v830_v25, %v241_v34 }
  0xbb   :  { %v214_v37 = vpop.f32.mrf.mxu0 }
  0xbc   :  { %v262_v38 = vmax.f32 %v242_v36, 0.0  ;;  %v215_v41 = vadd.f32 %v830_v25, %v214_v37 }
  0xbe   :  { %v271_v39 = vpack.c.bf16 %v262_v38, %v261_v35  ;;  %v251_v44 = vmax.f32 %v215_v41, 0.0 }
  0xc0   :  { %375 = vmatmul.bf16.vlgmr.msrb.gmra.mxu3 %v271_v39 }
  0xc1   :  { %v244_v40 = vpop.f32.mrf.mxu3 }
  0xc2   :  { %v245_v46 = vadd.f32 %v830_v25, %v244_v40 }
  0xc3   :  { %v216_v42 = vpop.f32.mrf.mxu0 }
  0xc4   :  { %v217_v43 = vadd.f32 %v830_v25, %v216_v42  ;;  %v263_v49 = vmax.f32 %v245_v46, 0.0 }
  0xc6   :  { %v252_v45 = vmax.f32 %v217_v43, 0.0 }
  0xc8   :  { %v266_v47 = vpack.c.bf16 %v252_v45, %v251_v44 }
  0xc9   :  { %v246_v48 = vpop.f32.mrf.mxu3 }
  0xca   :  { %350 = vmatmul.bf16.gmra.mxu1 %v266_v47  ;;  %v247_v50 = vadd.f32 %v830_v25, %v246_v48 }
  0xcb   :  { %v219_v51 = vpop.f32.mrf.mxu0 }
  0xcc   :  { %v264_v52 = vmax.f32 %v247_v50, 0.0  ;;  %v220_v54 = vadd.f32 %v830_v25, %v219_v51 }
  0xce   :  { %v272_v53 = vpack.c.bf16 %v264_v52, %v263_v49  ;;  %v253_v57 = vmax.f32 %v220_v54, 0.0  ;;  %v447_v49 = vlaneseq }
  0xd0   :  { %380 = vmatmul.bf16.gmra.mxu3 %v272_v53  ;;  %v1080_v50 = vand.u32 127, %v447_v49 }
  0xd2   :  { %vm449_vm0 = vcmp.lt.s32.totalorder %v1080_v50, 4 }
  0xd3   :  { %v221_v55 = vpop.f32.mrf.mxu0 }
  0xd4   :  { %v222_v56 = vadd.f32 %v830_v25, %v221_v55 }
  0xd6   :  { %v254_v58 = vmax.f32 %v222_v56, 0.0 }
  0xd8   :  { %v267_v59 = vpack.c.bf16 %v254_v58, %v253_v57 }
  0xda   :  { %355 = vmatmul.bf16.gmra.mxu1 %v267_v59 }
  0xdb   :  { %v224_v60 = vpop.f32.mrf.mxu0 }
  0xdc   :  { %v225_v61 = vadd.f32 %v830_v25, %v224_v60 }
  0xde   :  { %v255_v0 = vmax.f32 %v225_v61, 0.0 }
  0xe3   :  { %v226_v62 = vpop.f32.mrf.mxu0 }
  0xe4   :  { %v227_v63 = vadd.f32 %v830_v25, %v226_v62 }
  0xe6   :  { %v256_v1 = vmax.f32 %v227_v63, 0.0 }
  0xe8   :  { %v268_v2 = vpack.c.bf16 %v256_v1, %v255_v0 }
  0xea   :  { %360 = vmatmul.bf16.gmra.mxu1 %v268_v2 }
  0xeb   :  { %v229_v3 = vpop.f32.mrf.mxu0 }
  0xec   :  { %v230_v4 = vadd.f32 %v830_v25, %v229_v3 }
  0xee   :  { %v257_v7 = vmax.f32 %v230_v4, 0.0 }
  0xf3   :  { %v231_v5 = vpop.f32.mrf.mxu0 }
  0xf4   :  { %v232_v6 = vadd.f32 %v830_v25, %v231_v5 }
  0xf6   :  { %v258_v14 = vmax.f32 %v232_v6, 0.0 }
  0xf8   :  { %v269_v15 = vpack.c.bf16 %v258_v14, %v257_v7 }
  0xfa   :  { %365 = vmatmul.bf16.gmra.mxu1 %v269_v15 }
  0xfb   :  { %v234_v16 = vpop.f32.mrf.mxu0 }
  0xfc   :  { %v235_v17 = vadd.f32 %v830_v25, %v234_v16 }
  0xfe   :  { %v259_v22 = vmax.f32 %v235_v17, 0.0 }
 0x103   :  { %v236_v20 = vpop.f32.mrf.mxu0 }
 0x104   :  { %v237_v21 = vadd.f32 %v830_v25, %v236_v20 }
 0x106   :  { %v260_v23 = vmax.f32 %v237_v21, 0.0 }
 0x108   :  { %v270_v24 = vpack.c.bf16 %v260_v23, %v259_v22 }
 0x10a   :  { %370 = vmatmul.bf16.gmra.mxu1 %v270_v24 }
 0x137   :  { %v346_v26 = vpop.f32.mrf.mxu1 }
 0x13f   :  { %v348_v27 = vpop.f32.mrf.mxu1 }
 0x140   :  { %v386_v28 = vpack.c.bf16 %v348_v27, %v346_v26 }
 0x143   :  { %v376_v29 = vpop.f32.mrf.mxu3 }
 0x147   :  { %v351_v30 = vpop.f32.mrf.mxu1 }
 0x14b   :  { %v378_v31 = vpop.f32.mrf.mxu3 }
 0x14c   :  { %v392_v38 = vpack.c.bf16 %v378_v31, %v376_v29 }
 0x14f   :  { %v353_v32 = vpop.f32.mrf.mxu1 }
 0x150   :  { %v387_v33 = vpack.c.bf16 %v353_v32, %v351_v30 }
 0x153   :  { %v381_v34 = vpop.f32.mrf.mxu3 }
 0x157   :  { %v356_v35 = vpop.f32.mrf.mxu1 }
 0x15b   :  { %v383_v36 = vpop.f32.mrf.mxu3 }
 0x15c   :  { %v393_v37 = vpack.c.bf16 %v383_v36, %v381_v34 }
 0x15e   :  { %398 = vmatpush.bf16.msra.mxu2 %v393_v37  ;;  %814 = vmatpush.bf16.msra.mxu3 %v393_v37 }
 0x15f   :  { %v358_v25 = vpop.f32.mrf.mxu1 }
 0x160   :  { %v388_v48 = vpack.c.bf16 %v358_v25, %v356_v35 }
 0x162   :  { %399 = vmatpush.bf16.msra.mxu2 %v392_v38  ;;  %815 = vmatpush.bf16.msra.mxu3 %v392_v38 }
 0x167   :  { %v361_v39 = vpop.f32.mrf.mxu1 }
 0x16f   :  { %v363_v40 = vpop.f32.mrf.mxu1 }
 0x170   :  { %v389_v47 = vpack.c.bf16 %v363_v40, %v361_v39 }
 0x177   :  { %v366_v41 = vpop.f32.mrf.mxu1 }
 0x17f   :  { %v368_v42 = vpop.f32.mrf.mxu1 }
 0x180   :  { %v390_v46 = vpack.c.bf16 %v368_v42, %v366_v41 }
 0x187   :  { %v371_v43 = vpop.f32.mrf.mxu1 }
 0x18f   :  { %v373_v44 = vpop.f32.mrf.mxu1 }
 0x190   :  { %v391_v45 = vpack.c.bf16 %v373_v44, %v371_v43 }
 0x192   :  { %400 = vmatpush.bf16.msra.mxu2 %v391_v45  ;;  %816 = vmatpush.bf16.msra.mxu3 %v391_v45 }
 0x196   :  { %401 = vmatpush.bf16.msra.mxu2 %v390_v46  ;;  %817 = vmatpush.bf16.msra.mxu3 %v390_v46 }
 0x19a   :  { %402 = vmatpush.bf16.msra.mxu2 %v389_v47  ;;  %818 = vmatpush.bf16.msra.mxu3 %v389_v47 }
 0x19e   :  { %403 = vmatpush.bf16.msra.mxu2 %v388_v48  ;;  %819 = vmatpush.bf16.msra.mxu3 %v388_v48 }
 0x1a2   :  { %404 = vmatpush.bf16.msra.mxu2 %v387_v33  ;;  %820 = vmatpush.bf16.msra.mxu3 %v387_v33 }
 0x1a6   :  { %405 = vmatpush.bf16.msra.mxu2 %v386_v28  ;;  %821 = vmatpush.bf16.msra.mxu3 %v386_v28 }
 0x1a9   :  { %406 = vmatmul.bf16.vlgmr.msra.gmra.mxu2 %v1045_v8  ;;  %436 = vmatmul.bf16.vlgmr.msra.gmra.mxu3 %v1047_v9  ;;  %v1085_v8 = vld [vmem:[%s1287_s4] ss:$0 sm:$0xff]  ;;  %s1003_s4 = smov [#allocation8]  }
 0x1aa   :  { %s662_s10 = sshll.u32 %s1003_s4, 4  ;;  %s663_s10 = int_to_ptr.vmem [resolvable:$true] %s662_s10 }
 0x1b9   :  { %411 = vmatmul.bf16.gmra.mxu2 %v1051_v10  ;;  %441 = vmatmul.bf16.gmra.mxu3 %v1053_v11 }
 0x1c9   :  { %416 = vmatmul.bf16.gmra.mxu2 %v1057_v12 }
 0x1d9   :  { %421 = vmatmul.bf16.gmra.mxu2 %v1060_v13 }
 0x1e9   :  { %426 = vmatmul.bf16.gmra.mxu2 %v1063_v18 }
 0x1f9   :  { %431 = vmatmul.bf16.gmra.mxu2 %v1066_v19 }
 0x22c   :  { %v407_v9 = vpop.f32.mrf.mxu2  ;;  %v437_v11 = vpop.f32.mrf.mxu3 }
 0x22d   :  { %v408_v10 = vadd.f32 %v1085_v8, %v407_v9  ;;  %v438_v13 = vadd.f32 %v1085_v8, %v437_v11 }
 0x22f   :  { %v1091_v12 = vsel %vm449_vm0, %v408_v10, -1e+30  ;;  %v1097_v19 = vsel %vm449_vm0, %v438_v13, -1e+30 }
 0x230   :  { %466 = vmax.xlane.f32.xlu0 %v1091_v12 }
 0x234   :  { %v409_v18 = vpop.f32.mrf.mxu2  ;;  %v439_v5 = vpop.f32.mrf.mxu3 }
 0x235   :  { %v410_v51 = vadd.f32 %v1085_v8, %v409_v18  ;;  %v440_v30 = vadd.f32 %v1085_v8, %v439_v5 }
 0x237   :  { %v1108_v55 = vsel %vm449_vm0, %v410_v51, -1e+30  ;;  %v1174_v34 = vsel %vm449_vm0, %v440_v30, -1e+30 }
 0x238   :  { %490 = vmax.xlane.f32.xlu0 %v1097_v19 }
 0x23c   :  { %v412_v52 = vpop.f32.mrf.mxu2  ;;  %v442_v15 = vpop.f32.mrf.mxu3 }
 0x23d   :  { %v413_v53 = vadd.f32 %v1085_v8, %v412_v52  ;;  %v443_v35 = vadd.f32 %v1085_v8, %v442_v15 }
 0x23f   :  { %v1104_v54 = vsel %vm449_vm0, %v413_v53, -1e+30  ;;  %v1181_v36 = vsel %vm449_vm0, %v443_v35, -1e+30 }
 0x240   :  { %470 = vmax.xlane.f32.xlu1 %v1104_v54  ;;  %468 = vmax.xlane.f32.xlu0 %v1108_v55 }
 0x244   :  { %v414_v56 = vpop.f32.mrf.mxu2  ;;  %v444_v22 = vpop.f32.mrf.mxu3 }
 0x245   :  { %v415_v57 = vadd.f32 %v1085_v8, %v414_v56  ;;  %v445_v24 = vadd.f32 %v1085_v8, %v444_v22 }
 0x247   :  { %v1115_v58 = vsel %vm449_vm0, %v415_v57, -1e+30  ;;  %v1158_v28 = vsel %vm449_vm0, %v445_v24, -1e+30 }
 0x248   :  { %472 = vmax.xlane.f32.xlu1 %v1115_v58 }
 0x24c   :  { %v417_v59 = vpop.f32.mrf.mxu2 }
 0x24d   :  { %v418_v60 = vadd.f32 %v1085_v8, %v417_v59 }
 0x24f   :  { %v1121_v61 = vsel %vm449_vm0, %v418_v60, -1e+30 }
 0x250   :  { %474 = vmax.xlane.f32.xlu2 %v1121_v61 }
 0x254   :  { %v419_v62 = vpop.f32.mrf.mxu2 }
 0x255   :  { %v420_v63 = vadd.f32 %v1085_v8, %v419_v62 }
 0x257   :  { %v1127_v0 = vsel %vm449_vm0, %v420_v63, -1e+30 }
 0x258   :  { %476 = vmax.xlane.f32.xlu2 %v1127_v0 }
 0x25c   :  { %v422_v1 = vpop.f32.mrf.mxu2 }
 0x25d   :  { %v423_v2 = vadd.f32 %v1085_v8, %v422_v1 }
 0x25f   :  { %v1133_v3 = vsel %vm449_vm0, %v423_v2, -1e+30 }
 0x260   :  { %478 = vmax.xlane.f32.xlu0 %v1133_v3 }
 0x264   :  { %v424_v4 = vpop.f32.mrf.mxu2 }
 0x265   :  { %v425_v6 = vadd.f32 %v1085_v8, %v424_v4 }
 0x267   :  { %v1139_v7 = vsel %vm449_vm0, %v425_v6, -1e+30 }
 0x268   :  { %480 = vmax.xlane.f32.xlu1 %v1139_v7 }
 0x26c   :  { %v427_v14 = vpop.f32.mrf.mxu2 }
 0x26d   :  { %v428_v16 = vadd.f32 %v1085_v8, %v427_v14 }
 0x26f   :  { %v1145_v17 = vsel %vm449_vm0, %v428_v16, -1e+30 }
 0x270   :  { %482 = vmax.xlane.f32.xlu2 %v1145_v17 }
 0x274   :  { %v429_v20 = vpop.f32.mrf.mxu2 }
 0x275   :  { %v430_v21 = vadd.f32 %v1085_v8, %v429_v20 }
 0x277   :  { %v1151_v23 = vsel %vm449_vm0, %v430_v21, -1e+30 }
 0x278   :  { %484 = vmax.xlane.f32.xlu0 %v1151_v23 }
 0x27c   :  { %v432_v26 = vpop.f32.mrf.mxu2 }
 0x27d   :  { %v433_v27 = vadd.f32 %v1085_v8, %v432_v26 }
 0x27f   :  { %v1162_v29 = vsel %vm449_vm0, %v433_v27, -1e+30 }
 0x280   :  { %486 = vmax.xlane.f32.xlu1 %v1162_v29  ;;  %496 = vmax.xlane.f32.xlu0 %v1158_v28 }
 0x284   :  { %v434_v31 = vpop.f32.mrf.mxu2 }
 0x285   :  { %v435_v32 = vadd.f32 %v1085_v8, %v434_v31 }
 0x287   :  { %v1170_v33 = vsel %vm449_vm0, %v435_v32, -1e+30 }
 0x288   :  { %488 = vmax.xlane.f32.xlu2 %v1170_v33  ;;  %492 = vmax.xlane.f32.xlu1 %v1174_v34 }
 0x290   :  { %494 = vmax.xlane.f32.xlu2 %v1181_v36 }
 0x2a3   :  { %v1184_v37 = vpop.xlane.xlu0 %466 }
 0x2a4   :  { %v498_v38 = vsub.f32 %v1091_v12, %v1184_v37 }
 0x2a6   :  { %v514_v25 = vmul.f32 1.442695, %v498_v38 }
 0x2a8   :  { %832 = vpow2.f32 %v514_v25 }
 0x2ab   :  { %v1188_v39 = vpop.xlane.xlu0 %490 }
 0x2ac   :  { %v510_v40 = vsub.f32 %v1097_v19, %v1188_v39 }
 0x2ae   :  { %v833_v41 = vpop.eup %832  ;;  %v538_v42 = vmul.f32 1.442695, %v510_v40 }
 0x2af   :  { %546 = vadd.xlane.f32.xlu1 %v833_v41 }
 0x2b0   :  { %834 = vpow2.f32 %v538_v42 }
 0x2b3   :  { %v1192_v43 = vpop.xlane.xlu1 %470  ;;  %v1194_v44 = vpop.xlane.xlu0 %468 }
 0x2b4   :  { %v500_v45 = vsub.f32 %v1104_v54, %v1192_v43  ;;  %v499_v46 = vsub.f32 %v1108_v55, %v1194_v44 }
 0x2b6   :  { %v835_v47 = vpop.eup %834  ;;  %v518_v48 = vmul.f32 1.442695, %v500_v45  ;;  %v516_v49 = vmul.f32 1.442695, %v499_v46 }
 0x2b7   :  { %570 = vadd.xlane.f32.xlu1 %v835_v47 }
 0x2b8   :  { %836 = vpow2.f32 %v518_v48 }
 0x2b9   :  { %838 = vpow2.f32 %v516_v49 }
 0x2bb   :  { %v1200_v50 = vpop.xlane.xlu1 %472 }
 0x2bc   :  { %v501_v8 = vsub.f32 %v1115_v58, %v1200_v50 }
 0x2be   :  { %v837_v9 = vpop.eup %836  ;;  %v520_v10 = vmul.f32 1.442695, %v501_v8 }
 0x2bf   :  { %v839_v11 = vpop.eup %838  ;;  %550 = vadd.xlane.f32.xlu0 %v837_v9 }
 0x2c0   :  { %840 = vpow2.f32 %v520_v10  ;;  %548 = vadd.xlane.f32.xlu2 %v839_v11 }
 0x2c3   :  { %v1204_v13 = vpop.xlane.xlu2 %474 }
 0x2c4   :  { %v502_v18 = vsub.f32 %v1121_v61, %v1204_v13 }
 0x2c6   :  { %v841_v51 = vpop.eup %840  ;;  %v522_v52 = vmul.f32 1.442695, %v502_v18 }
 0x2c7   :  { %552 = vadd.xlane.f32.xlu1 %v841_v51 }
 0x2c8   :  { %842 = vpow2.f32 %v522_v52 }
 0x2cb   :  { %v1208_v53 = vpop.xlane.xlu2 %476 }
 0x2cc   :  { %v503_v56 = vsub.f32 %v1127_v0, %v1208_v53 }
 0x2ce   :  { %v843_v57 = vpop.eup %842  ;;  %v524_v59 = vmul.f32 1.442695, %v503_v56 }
 0x2cf   :  { %554 = vadd.xlane.f32.xlu2 %v843_v57 }
 0x2d0   :  { %844 = vpow2.f32 %v524_v59 }
 0x2d3   :  { %v1212_v60 = vpop.xlane.xlu0 %478 }
 0x2d4   :  { %v504_v62 = vsub.f32 %v1133_v3, %v1212_v60 }
 0x2d6   :  { %v845_v63 = vpop.eup %844  ;;  %v526_v1 = vmul.f32 1.442695, %v504_v62 }
 0x2d7   :  { %556 = vadd.xlane.f32.xlu0 %v845_v63 }
 0x2d8   :  { %846 = vpow2.f32 %v526_v1 }
 0x2db   :  { %v1216_v2 = vpop.xlane.xlu1 %480 }
 0x2dc   :  { %v505_v4 = vsub.f32 %v1139_v7, %v1216_v2 }
 0x2de   :  { %v847_v5 = vpop.eup %846  ;;  %v528_v6 = vmul.f32 1.442695, %v505_v4 }
 0x2df   :  { %558 = vadd.xlane.f32.xlu1 %v847_v5 }
 0x2e0   :  { %848 = vpow2.f32 %v528_v6 }
 0x2e3   :  { %v1220_v14 = vpop.xlane.xlu2 %482 }
 0x2e4   :  { %v506_v15 = vsub.f32 %v1145_v17, %v1220_v14 }
 0x2e6   :  { %v849_v16 = vpop.eup %848  ;;  %v530_v20 = vmul.f32 1.442695, %v506_v15 }
 0x2e7   :  { %560 = vadd.xlane.f32.xlu2 %v849_v16 }
 0x2e8   :  { %850 = vpow2.f32 %v530_v20 }
 0x2eb   :  { %v1224_v21 = vpop.xlane.xlu0 %484 }
 0x2ec   :  { %v507_v22 = vsub.f32 %v1151_v23, %v1224_v21 }
 0x2ee   :  { %v851_v24 = vpop.eup %850  ;;  %v532_v26 = vmul.f32 1.442695, %v507_v22 }
 0x2ef   :  { %562 = vadd.xlane.f32.xlu0 %v851_v24 }
 0x2f0   :  { %852 = vpow2.f32 %v532_v26 }
 0x2f3   :  { %v1228_v27 = vpop.xlane.xlu1 %486  ;;  %v1230_v30 = vpop.xlane.xlu0 %496 }
 0x2f4   :  { %v508_v31 = vsub.f32 %v1162_v29, %v1228_v27  ;;  %v513_v32 = vsub.f32 %v1158_v28, %v1230_v30 }
 0x2f6   :  { %v853_v35 = vpop.eup %852  ;;  %v534_v38 = vmul.f32 1.442695, %v508_v31  ;;  %v544_v25 = vmul.f32 1.442695, %v513_v32 }
 0x2f7   :  { %564 = vadd.xlane.f32.xlu1 %v853_v35 }
 0x2f8   :  { %854 = vpow2.f32 %v534_v38 }
 0x2f9   :  { %856 = vpow2.f32 %v544_v25 }
 0x2fb   :  { %v1236_v40 = vpop.xlane.xlu2 %488  ;;  %v1238_v41 = vpop.xlane.xlu1 %492 }
 0x2fc   :  { %v509_v42 = vsub.f32 %v1170_v33, %v1236_v40  ;;  %v511_v45 = vsub.f32 %v1174_v34, %v1238_v41 }
 0x2fe   :  { %v855_v46 = vpop.eup %854  ;;  %v536_v47 = vmul.f32 1.442695, %v509_v42  ;;  %v540_v48 = vmul.f32 1.442695, %v511_v45 }
 0x2ff   :  { %v857_v49 = vpop.eup %856  ;;  %566 = vadd.xlane.f32.xlu2 %v855_v46 }
 0x300   :  { %858 = vpow2.f32 %v536_v47  ;;  %576 = vadd.xlane.f32.xlu1 %v857_v49 }
 0x301   :  { %860 = vpow2.f32 %v540_v48 }
 0x303   :  { %v1244_v8 = vpop.xlane.xlu2 %494 }
 0x304   :  { %v512_v9 = vsub.f32 %v1181_v36, %v1244_v8 }
 0x306   :  { %v859_v10 = vpop.eup %858  ;;  %v542_v11 = vmul.f32 1.442695, %v512_v9 }
 0x307   :  { %v861_v18 = vpop.eup %860  ;;  %568 = vadd.xlane.f32.xlu0 %v859_v10 }
 0x308   :  { %862 = vpow2.f32 %v542_v11  ;;  %572 = vadd.xlane.f32.xlu2 %v861_v18 }
 0x30e   :  { %v863_v51 = vpop.eup %862 }
 0x30f   :  { %574 = vadd.xlane.f32.xlu0 %v863_v51 }
 0x322   :  { %v547_v52 = vpop.xlane.xlu1 %546 }
 0x323   :  { %864 = vlog2.f32 %v547_v52 }
 0x329   :  { %v865_v56 = vpop.eup %864 }
 0x32a   :  { %v579_v57 = vmul.f32 0.6931472, %v865_v56  ;;  %v571_v59 = vpop.xlane.xlu1 %570 }
 0x32b   :  { %866 = vlog2.f32 %v571_v59 }
 0x32c   :  { %v610_v62 = vadd.f32 %v579_v57, %v1184_v37 }
 0x32e   :  { %v626_v63 = vsub.f32 %v1091_v12, %v610_v62 }
 0x330   :  { %642 = vst [vmem:[#allocation8] sm:$0xff] %v626_v63 }
 0x331   :  { %v867_v1 = vpop.eup %866 }
 0x332   :  { %v603_v4 = vmul.f32 0.6931472, %v867_v1  ;;  %v551_v5 = vpop.xlane.xlu0 %550 }
 0x333   :  { %v549_v6 = vpop.xlane.xlu2 %548  ;;  %868 = vlog2.f32 %v551_v5 }
 0x334   :  { %v622_v15 = vadd.f32 %v603_v4, %v1188_v39  ;;  %870 = vlog2.f32 %v549_v6 }
 0x336   :  { %v638_v16 = vsub.f32 %v1097_v19, %v622_v15 }
 0x338   :  { %654 = vst [vmem:[#allocation8 + $0x60] sm:$0xff] %v638_v16 }
 0x339   :  { %v869_v20 = vpop.eup %868 }
 0x33a   :  { %v871_v22 = vpop.eup %870  ;;  %v583_v24 = vmul.f32 0.6931472, %v869_v20  ;;  %v553_v26 = vpop.xlane.xlu1 %552 }
 0x33b   :  { %v581_v31 = vmul.f32 0.6931472, %v871_v22  ;;  %872 = vlog2.f32 %v553_v26 }
 0x33c   :  { %v612_v12 = vadd.f32 %v583_v24, %v1192_v43 }
 0x33d   :  { %v611_v37 = vadd.f32 %v581_v31, %v1194_v44 }
 0x33e   :  { %v628_v32 = vsub.f32 %v1104_v54, %v612_v12 }
 0x33f   :  { %v627_v35 = vsub.f32 %v1108_v55, %v611_v37 }
 0x340   :  { %644 = vst [vmem:[#allocation8 + $0x10] sm:$0xff] %v628_v32 }
 0x341   :  { %v873_v39 = vpop.eup %872  ;;  %643 = vst [vmem:[#allocation8 + $0x8] sm:$0xff] %v627_v35 }
 0x342   :  { %v585_v38 = vmul.f32 0.6931472, %v873_v39  ;;  %v555_v19 = vpop.xlane.xlu2 %554 }
 0x343   :  { %874 = vlog2.f32 %v555_v19 }
 0x344   :  { %v613_v25 = vadd.f32 %v585_v38, %v1200_v50 }
 0x346   :  { %v629_v42 = vsub.f32 %v1115_v58, %v613_v25 }
 0x348   :  { %645 = vst [vmem:[#allocation8 + $0x18] sm:$0xff] %v629_v42 }
 0x349   :  { %v875_v45 = vpop.eup %874 }
 0x34a   :  { %v587_v46 = vmul.f32 0.6931472, %v875_v45  ;;  %v557_v43 = vpop.xlane.xlu0 %556 }
 0x34b   :  { %876 = vlog2.f32 %v557_v43 }
 0x34c   :  { %v614_v44 = vadd.f32 %v587_v46, %v1204_v13 }
 0x34e   :  { %v630_v54 = vsub.f32 %v1121_v61, %v614_v44 }
 0x350   :  { %646 = vst [vmem:[#allocation8 + $0x20] sm:$0xff] %v630_v54 }
 0x351   :  { %v877_v55 = vpop.eup %876 }
 0x352   :  { %v589_v47 = vmul.f32 0.6931472, %v877_v55  ;;  %v559_v48 = vpop.xlane.xlu1 %558 }
 0x353   :  { %878 = vlog2.f32 %v559_v48 }
 0x354   :  { %v615_v49 = vadd.f32 %v589_v47, %v1208_v53 }
 0x356   :  { %v631_v50 = vsub.f32 %v1127_v0, %v615_v49 }
 0x358   :  { %647 = vst [vmem:[#allocation8 + $0x28] sm:$0xff] %v631_v50 }
 0x359   :  { %v879_v58 = vpop.eup %878 }
 0x35a   :  { %v591_v9 = vmul.f32 0.6931472, %v879_v58  ;;  %v561_v10 = vpop.xlane.xlu2 %560 }
 0x35b   :  { %880 = vlog2.f32 %v561_v10 }
 0x35c   :  { %v616_v11 = vadd.f32 %v591_v9, %v1212_v60 }
 0x35e   :  { %v632_v13 = vsub.f32 %v1133_v3, %v616_v11 }
 0x360   :  { %648 = vst [vmem:[#allocation8 + $0x30] sm:$0xff] %v632_v13 }
 0x361   :  { %v881_v61 = vpop.eup %880 }
 0x362   :  { %v593_v18 = vmul.f32 0.6931472, %v881_v61  ;;  %v563_v51 = vpop.xlane.xlu0 %562 }
 0x363   :  { %882 = vlog2.f32 %v563_v51 }
 0x364   :  { %v617_v52 = vadd.f32 %v593_v18, %v1216_v2 }
 0x366   :  { %v633_v53 = vsub.f32 %v1139_v7, %v617_v52 }
 0x368   :  { %649 = vst [vmem:[#allocation8 + $0x38] sm:$0xff] %v633_v53 }
 0x369   :  { %v883_v0 = vpop.eup %882 }
 0x36a   :  { %v595_v56 = vmul.f32 0.6931472, %v883_v0  ;;  %v565_v57 = vpop.xlane.xlu1 %564 }
 0x36b   :  { %884 = vlog2.f32 %v565_v57 }
 0x36c   :  { %v618_v59 = vadd.f32 %v595_v56, %v1220_v14 }
 0x36e   :  { %v634_v60 = vsub.f32 %v1145_v17, %v618_v59 }
 0x370   :  { %650 = vst [vmem:[#allocation8 + $0x40] sm:$0xff] %v634_v60 }
 0x371   :  { %v885_v3 = vpop.eup %884 }
 0x372   :  { %v597_v62 = vmul.f32 0.6931472, %v885_v3  ;;  %v567_v63 = vpop.xlane.xlu2 %566 }
 0x373   :  { %886 = vlog2.f32 %v567_v63  ;;  %v577_v1 = vpop.xlane.xlu1 %576 }
 0x374   :  { %v619_v4 = vadd.f32 %v597_v62, %v1224_v21  ;;  %888 = vlog2.f32 %v577_v1 }
 0x376   :  { %v635_v7 = vsub.f32 %v1151_v23, %v619_v4 }
 0x378   :  { %651 = vst [vmem:[#allocation8 + $0x48] sm:$0xff] %v635_v7 }
 0x379   :  { %v887_v2 = vpop.eup %886 }
 0x37a   :  { %v889_v5 = vpop.eup %888  ;;  %v599_v6 = vmul.f32 0.6931472, %v887_v2  ;;  %v569_v15 = vpop.xlane.xlu0 %568 }
 0x37b   :  { %v609_v16 = vmul.f32 0.6931472, %v889_v5  ;;  %v573_v14 = vpop.xlane.xlu2 %572  ;;  %890 = vlog2.f32 %v569_v15 }
 0x37c   :  { %v620_v17 = vadd.f32 %v599_v6, %v1228_v27  ;;  %892 = vlog2.f32 %v573_v14 }
 0x37d   :  { %v625_v20 = vadd.f32 %v609_v16, %v1230_v30 }
 0x37e   :  { %v636_v22 = vsub.f32 %v1162_v29, %v620_v17 }
 0x37f   :  { %v641_v21 = vsub.f32 %v1158_v28, %v625_v20 }
 0x380   :  { %652 = vst [vmem:[#allocation8 + $0x50] sm:$0xff] %v636_v22 }
 0x381   :  { %v891_v24 = vpop.eup %890  ;;  %657 = vst [vmem:[#allocation8 + $0x78] sm:$0xff] %v641_v21 }
 0x382   :  { %v893_v23 = vpop.eup %892  ;;  %v601_v26 = vmul.f32 0.6931472, %v891_v24  ;;  %v575_v31 = vpop.xlane.xlu0 %574 }
 0x383   :  { %v605_v12 = vmul.f32 0.6931472, %v893_v23  ;;  %894 = vlog2.f32 %v575_v31 }
 0x384   :  { %v621_v37 = vadd.f32 %v601_v26, %v1236_v40 }
 0x385   :  { %v623_v32 = vadd.f32 %v605_v12, %v1238_v41 }
 0x386   :  { %v637_v27 = vsub.f32 %v1170_v33, %v621_v37 }
 0x387   :  { %v639_v30 = vsub.f32 %v1174_v34, %v623_v32 }
 0x388   :  { %653 = vst [vmem:[#allocation8 + $0x58] sm:$0xff] %v637_v27 }
 0x389   :  { %v895_v29 = vpop.eup %894  ;;  %655 = vst [vmem:[#allocation8 + $0x68] sm:$0xff] %v639_v30 }
 0x38a   :  { %v607_v28 = vmul.f32 0.6931472, %v895_v29 }
 0x38c   :  { %v624_v35 = vadd.f32 %v607_v28, %v1244_v8 }
 0x38e   :  { %v640_v40 = vsub.f32 %v1181_v36, %v624_v35 }
 0x390   :  { %656 = vst [vmem:[#allocation8 + $0x70] sm:$0xff] %v640_v40 }
 0x391   :  { %670 = dma.vmem_to_hbm [thread:$0]  %s663_s10, 2048, %s665_s13, [#allocation4], %s1004_s14, %s1004_s14, %s1005_s15  }
 0x392   :  { %996 = dma.done.wait [#allocation4], 2048  }
 0x393   :  { %997 = vsyncadd [#allocation4], 4294965248 }
 0x394   :  { %675 = vsyncpa [#allocation3], 1 }
 0x395   :  { %676 = vsyncpa [#allocation6], 1 }
 0x396   :  { %677 = vsyncpa [#allocation4], 1 }

</bundles_post_ra>
